<compile_context>
chip_gen: v5e
topology: v5e:2x2
jax: 0.10.0
libtpu: 0.0.40
codegen_flags: <defaults>
</compile_context>

<pallas_src>
import functools

import jax
import jax.numpy as jnp
from jax.experimental import pallas as pl
from jax.experimental.pallas import tpu as pltpu

LANES = 128
SUBLANES = 8
# 2048 x 128 x 4B = 1 MiB of f32 per input block.
MAX_TILE_ROWS = 2048
# Leading "parallel" grid axis -> both TensorCores on v7x (harmless elsewhere).
NUM_PARTS = 2


def _huber_kernel(pred_ref, true_ref, out_ref, acc_ref, *,
                  delta, tile_rows, total_rows, blocks_per_part):
    part = pl.program_id(0)
    step = pl.program_id(1)

    # Zero the per-part vector accumulator at the start of its reduction pass.
    @pl.when(step == 0)
    def _():
        acc_ref[...] = jnp.zeros_like(acc_ref)

    # Elementwise hot path (VPU). Narrow inputs are upcast here, not in HBM.
    pred = pred_ref[...].astype(jnp.float32)
    true = true_ref[...].astype(jnp.float32)
    error = true - pred
    abs_error = jnp.abs(error)
    quadratic = jnp.where(
        abs_error < delta,
        0.5 * abs_error * abs_error,
        delta * (abs_error - 0.5 * delta),
    )
    linear = abs_error - quadratic
    loss = 0.5 * quadratic * quadratic + delta * linear

    # Mask rows beyond the real data (partial last block / clamped duplicate
    # steps of an uneven per-core split). Lane-level zero padding already
    # contributes exactly 0 loss, so a row mask suffices.
    block_idx = part * blocks_per_part + step
    row_ids = block_idx * tile_rows + jax.lax.broadcasted_iota(
        jnp.int32, loss.shape, 0)
    loss = jnp.where(row_ids < total_rows, loss, 0.0)

    # Vector accumulation: pure VPU adds every step, reduce only at the end.
    acc_ref[...] += loss

    # Finalize this part: fold the (tile_rows,128) accumulator into a single
    # lane-dense (8,128) partial-sum slab. The reshape is layout-trivial and
    # the axis-0 sum is vreg-wise VPU adds.
    @pl.when(step == pl.num_programs(1) - 1)
    def _():
        out_ref[0, :, :] = acc_ref[...].reshape(
            tile_rows // SUBLANES, SUBLANES, LANES).sum(axis=0)


def huber_loss(y_pred, y_true, delta=1.5):
    assert y_pred.shape == y_true.shape
    total_n = int(y_pred.size)

    pred = jnp.ravel(y_pred)
    true = jnp.ravel(y_true)

    # Only pad when numel is not lane-aligned (at most 127 zeros; zero error
    # contributes exactly 0 loss, and we divide by the true element count).
    pad = (-total_n) % LANES
    if pad:
        pred = jnp.pad(pred, (0, pad))
        true = jnp.pad(true, (0, pad))
    rows = (total_n + pad) // LANES

    # Tile rows: multiple of 8, capped at MAX_TILE_ROWS (~1 MiB/input block).
    tile_rows = min(MAX_TILE_ROWS, pl.cdiv(rows, SUBLANES) * SUBLANES)
    nblocks = pl.cdiv(rows, tile_rows)
    parts = NUM_PARTS if nblocks >= NUM_PARTS else 1
    blocks_per_part = pl.cdiv(nblocks, parts)

    pred2d = pred.reshape(rows, LANES)
    true2d = true.reshape(rows, LANES)

    if parts * blocks_per_part == nblocks:
        def in_map(c, i):
            return (c * blocks_per_part + i, 0)
    else:
        # Uneven split: clamp so we never DMA past the end of the array; the
        # clamped duplicate steps are zeroed by the in-kernel row mask.
        def in_map(c, i):
            return (jnp.minimum(c * blocks_per_part + i, nblocks - 1), 0)

    # TODO(synk): delta / total_n are baked into the closure (recompile per
    # distinct delta); could be passed as SMEM scalars if that ever matters.
    kernel = functools.partial(
        _huber_kernel,
        delta=float(delta),
        tile_rows=tile_rows,
        total_rows=rows,
        blocks_per_part=blocks_per_part,
    )

    partials = pl.pallas_call(
        kernel,
        out_shape=jax.ShapeDtypeStruct((parts, SUBLANES, LANES), jnp.float32),
        grid_spec=pltpu.PrefetchScalarGridSpec(
            num_scalar_prefetch=0,
            grid=(parts, blocks_per_part),
            in_specs=[
                pl.BlockSpec((tile_rows, LANES), in_map),
                pl.BlockSpec((tile_rows, LANES), in_map),
            ],
            out_specs=pl.BlockSpec((1, SUBLANES, LANES),
                                   lambda c, i: (c, 0, 0)),
            scratch_shapes=[pltpu.VMEM((tile_rows, LANES), jnp.float32)],
        ),
        compiler_params=pltpu.CompilerParams(
            dimension_semantics=("parallel", "arbitrary"),
        ),
    )(pred2d, true2d)

    # Single tiny final reduce + mean normalisation.
    return jnp.sum(partials) / total_n


def _reference(y_pred, y_true, delta=1.5):
    # Same formula as the PyTorch module's forward (kept verbatim).
    error = y_true - y_pred
    abs_error = jnp.abs(error)
    quadratic = jnp.where(
        abs_error < delta, 0.5 * abs_error**2, delta * (abs_error - 0.5 * delta)
    )
    linear = abs_error - quadratic
    loss = 0.5 * quadratic**2 + delta * linear
    return jnp.mean(loss)


if __name__ == "__main__":
    key = jax.random.PRNGKey(0)
    k1, k2 = jax.random.split(key)

    # Small NCHW-like shape, as in a typical conv activation.
    shape = (2, 4, 16, 16)
    y_pred = jax.random.normal(k1, shape, dtype=jnp.float32)
    y_true = jax.random.normal(k2, shape, dtype=jnp.float32)

    out = huber_loss(y_pred, y_true, delta=1.5)
    out = jax.block_until_ready(out)
    ref = _reference(y_pred, y_true, delta=1.5)
    assert jnp.allclose(out, ref, rtol=1e-5, atol=1e-6), (out, ref)

    # Second check exercising the multi-block + two-part (v7x dual-TC) path.
    k3, k4 = jax.random.split(k2)
    shape2 = (8, 8, 64, 128)  # 524288 elems -> 4096 rows -> 2 blocks, 2 parts
    y_pred2 = jax.random.normal(k3, shape2, dtype=jnp.float32)
    y_true2 = jax.random.normal(k4, shape2, dtype=jnp.float32)
    out2 = jax.block_until_ready(huber_loss(y_pred2, y_true2, delta=1.5))
    ref2 = _reference(y_pred2, y_true2, delta=1.5)
    assert jnp.allclose(out2, ref2, rtol=1e-5, atol=1e-6), (out2, ref2)

    print("KERNEL_OK")
</pallas_src>

<mosaic_0001>
module attributes {stable_mosaic.version = 11 : i64} {
  func.func @_huber_kernel(%arg0: i32, %arg1: i32, %arg2: memref<16x128xf32, #tpu.memory_space<vmem>>, %arg3: memref<16x128xf32, #tpu.memory_space<vmem>>, %arg4: memref<1x8x128xf32, #tpu.memory_space<vmem>>, %arg5: memref<16x128xf32, #tpu.memory_space<vmem>>) attributes {dimension_semantics = [#tpu.dimension_semantics<parallel>, #tpu.dimension_semantics<arbitrary>], iteration_bounds = array<i64: 1, 1>, scalar_prefetch = 0 : i64, scratch_operands = 1 : i64, tpu.core_type = #tpu.core_type<tc>, window_params = [{transform_indices = @transform_0, window_bounds = array<i64: 16, 128>}, {transform_indices = @transform_1, window_bounds = array<i64: 16, 128>}, {transform_indices = @transform_2, window_bounds = array<i64: 1, 8, 128>}]} {
    %c0_i32 = arith.constant 0 : i32
    %0 = arith.cmpi eq, %arg1, %c0_i32 : i32
    %1 = arith.extui %0 : i1 to i32
    %c0_i32_0 = arith.constant 0 : i32
    %2 = arith.cmpi ne, %1, %c0_i32_0 : i32
    scf.if %2 {
      %cst_17 = arith.constant 0.000000e+00 : f32
      %40 = vector.broadcast %cst_17 : f32 to vector<16x128xf32>
      %c0_18 = arith.constant 0 : index
      %c0_19 = arith.constant 0 : index
      %41 = vector.load %arg5[%c0_18, %c0_19] : memref<16x128xf32, #tpu.memory_space<vmem>>, vector<16x128xf32>
      tpu.vector_store %arg5[%c0_18, %c0_19], %40 {strides = array<i32>} : memref<16x128xf32, #tpu.memory_space<vmem>>, vector<16x128xf32>,
    } else {
    }
    %c0 = arith.constant 0 : index
    %c0_1 = arith.constant 0 : index
    %3 = vector.load %arg2[%c0, %c0_1] : memref<16x128xf32, #tpu.memory_space<vmem>>, vector<16x128xf32>
    %c0_2 = arith.constant 0 : index
    %c0_3 = arith.constant 0 : index
    %4 = vector.load %arg3[%c0_2, %c0_3] : memref<16x128xf32, #tpu.memory_space<vmem>>, vector<16x128xf32>
    %5 = arith.subf %4, %3 : vector<16x128xf32>
    %6 = math.absf %5 : vector<16x128xf32>
    %cst = arith.constant 1.500000e+00 : f32
    %7 = vector.broadcast %cst : f32 to vector<16x128xf32>
    %8 = arith.cmpf olt, %6, %7 : vector<16x128xf32>
    %cst_4 = arith.constant 5.000000e-01 : f32
    %9 = vector.broadcast %cst_4 : f32 to vector<16x128xf32>
    %10 = arith.mulf %9, %6 : vector<16x128xf32>
    %11 = arith.mulf %10, %6 : vector<16x128xf32>
    %cst_5 = arith.constant 7.500000e-01 : f32
    %12 = vector.broadcast %cst_5 : f32 to vector<16x128xf32>
    %13 = arith.subf %6, %12 : vector<16x128xf32>
    %cst_6 = arith.constant 1.500000e+00 : f32
    %14 = vector.broadcast %cst_6 : f32 to vector<16x128xf32>
    %15 = arith.mulf %14, %13 : vector<16x128xf32>
    %16 = arith.select %8, %11, %15 : vector<16x128xi1>, vector<16x128xf32>
    %17 = arith.subf %6, %16 : vector<16x128xf32>
    %cst_7 = arith.constant 5.000000e-01 : f32
    %18 = vector.broadcast %cst_7 : f32 to vector<16x128xf32>
    %19 = arith.mulf %18, %16 : vector<16x128xf32>
    %20 = arith.mulf %19, %16 : vector<16x128xf32>
    %cst_8 = arith.constant 1.500000e+00 : f32
    %21 = vector.broadcast %cst_8 : f32 to vector<16x128xf32>
    %22 = arith.mulf %21, %17 : vector<16x128xf32>
    %23 = arith.addf %20, %22 : vector<16x128xf32>
    %c1_i32 = arith.constant 1 : i32
    %24 = arith.muli %arg0, %c1_i32 : i32
    %25 = arith.addi %24, %arg1 : i32
    %c16_i32 = arith.constant 16 : i32
    %26 = arith.muli %25, %c16_i32 : i32
    %27 = tpu.iota {dimensions = array<i32: 0>} : vector<16x128xi32>
    %28 = vector.broadcast %26 : i32 to vector<16x128xi32>
    %29 = arith.addi %28, %27 : vector<16x128xi32>
    %c16_i32_9 = arith.constant 16 : i32
    %30 = vector.broadcast %c16_i32_9 : i32 to vector<16x128xi32>
    %31 = arith.cmpi slt, %29, %30 : vector<16x128xi32>
    %cst_10 = arith.constant 0.000000e+00 : f32
    %32 = vector.broadcast %cst_10 : f32 to vector<16x128xf32>
    %33 = arith.select %31, %23, %32 : vector<16x128xi1>, vector<16x128xf32>
    %c0_11 = arith.constant 0 : index
    %c0_12 = arith.constant 0 : index
    %34 = vector.load %arg5[%c0_11, %c0_12] : memref<16x128xf32, #tpu.memory_space<vmem>>, vector<16x128xf32>
    %35 = arith.addf %34, %33 : vector<16x128xf32>
    %c0_13 = arith.constant 0 : index
    %c0_14 = arith.constant 0 : index
    %36 = vector.load %arg5[%c0_13, %c0_14] : memref<16x128xf32, #tpu.memory_space<vmem>>, vector<16x128xf32>
    tpu.vector_store %arg5[%c0_13, %c0_14], %35 {strides = array<i32>} : memref<16x128xf32, #tpu.memory_space<vmem>>, vector<16x128xf32>,
    %c0_i32_15 = arith.constant 0 : i32
    %37 = arith.cmpi eq, %arg1, %c0_i32_15 : i32
    %38 = arith.extui %37 : i1 to i32
    %c0_i32_16 = arith.constant 0 : i32
    %39 = arith.cmpi ne, %38, %c0_i32_16 : i32
    scf.if %39 {
      %c0_17 = arith.constant 0 : index
      %c0_18 = arith.constant 0 : index
      %40 = vector.load %arg5[%c0_17, %c0_18] : memref<16x128xf32, #tpu.memory_space<vmem>>, vector<16x128xf32>
      %41 = vector.shape_cast %40 : vector<16x128xf32> to vector<2x8x128xf32>
      %cst_19 = arith.constant dense<0.000000e+00> : vector<8x128xf32>
      %42 = vector.multi_reduction <add>, %41, %cst_19 [0] : vector<2x8x128xf32> to vector<8x128xf32>
      %c0_20 = arith.constant 0 : index
      %c0_21 = arith.constant 0 : index
      %c0_22 = arith.constant 0 : index
      %43 = vector.load %arg4[%c0_20, %c0_21, %c0_22] : memref<1x8x128xf32, #tpu.memory_space<vmem>>, vector<1x8x128xf32>
      %44 = vector.shape_cast %43 : vector<1x8x128xf32> to vector<8x128xf32>
      %45 = vector.shape_cast %42 : vector<8x128xf32> to vector<1x8x128xf32>
      tpu.vector_store %arg4[%c0_20, %c0_21, %c0_22], %45 {strides = array<i32>} : memref<1x8x128xf32, #tpu.memory_space<vmem>>, vector<1x8x128xf32>,
    } else {
    }
    return
  }
  func.func @transform_0(%arg0: i32, %arg1: i32) -> (i32, i32) {
    %c1_i32 = arith.constant 1 : i32
    %0 = arith.muli %arg0, %c1_i32 : i32
    %1 = arith.addi %0, %arg1 : i32
    %c0_i32 = arith.constant 0 : i32
    %c0_i32_0 = arith.constant 0 : i32
    return %1, %c0_i32 : i32, i32
  }
  func.func @transform_1(%arg0: i32, %arg1: i32) -> (i32, i32) {
    %c1_i32 = arith.constant 1 : i32
    %0 = arith.muli %arg0, %c1_i32 : i32
    %1 = arith.addi %0, %arg1 : i32
    %c0_i32 = arith.constant 0 : i32
    %c0_i32_0 = arith.constant 0 : i32
    return %1, %c0_i32 : i32, i32
  }
  func.func @transform_2(%arg0: i32, %arg1: i32) -> (i32, i32, i32) {
    %c0_i32 = arith.constant 0 : i32
    %c0_i32_0 = arith.constant 0 : i32
    %c0_i32_1 = arith.constant 0 : i32
    return %arg0, %c0_i32, %c0_i32_0 : i32, i32, i32
  }
}

</mosaic_0001>

<bundles_post_ra>
// kernel: tpu_custom_call.1
= control target key start
LH: loop header
LB: loop body
LE: loop exit
PB: predicated region body
PF: predicated region fallthrough
CT: control target
= control target key end

     0   :  { %7 = vsyncpa [#allocation4], 0  ;;  %s249_s0 = inlined_call_operand.hbm [shape: f32[16,128], index: 0, kind: input, shape index: {}]   ;;  %s250_s1 = inlined_call_operand.hbm [shape: f32[16,128], index: 1, kind: input, shape index: {}]   ;;  %s251_s2 = inlined_call_operand.hbm [shape: f32[1,8,128], index: 2, kind: output, shape index: {}]  }
   0x1   :  { %8 = vsyncpa [#allocation7], 0 }
   0x2   :  { %9 = vsyncpa [#allocation5], 0  ;;  %s18_s11 = sshll.u32 %s249_s0, 4  ;;  %s220_s12 = smov [#allocation3]   ;;  %s19_s11 = int_to_ptr.hbm [resolvable:$true] %s18_s11 }
   0x3   :  { %s20_s13 = sshll.u32 %s220_s12, 4  ;;  %s35_s16 = sshll.u32 %s250_s1, 4  ;;  %s21_s13 = int_to_ptr.vmem [resolvable:$true] %s20_s13  ;;  %s36_s16 = int_to_ptr.hbm [resolvable:$true] %s35_s16 }
   0x4   :  { %s221_s17 = smov 128   ;;  %s222_s18 = smov 8  }
   0x5   :  { %26 = dma.hbm_to_vmem [thread:$0]  %s19_s11, 256, %s21_s13, [#allocation4], %s221_s17, %s221_s17, %s222_s18  }
   0x6   :  { %s223_s19 = smov [#allocation6]  }
   0x7   :  { %s37_s20 = sshll.u32 %s223_s19, 4  ;;  %s38_s20 = int_to_ptr.vmem [resolvable:$true] %s37_s20 }
   0x8   :  { %43 = dma.hbm_to_vmem [thread:$0]  %s36_s16, 256, %s38_s20, [#allocation7], %s221_s17, %s221_s17, %s222_s18  }
   0x9   :  { %214 = dma.done.wait [#allocation4], 256  }
   0xa   :  { %215 = vsyncadd [#allocation4], 4294967040 }
   0xb   :  { %216 = dma.done.wait [#allocation7], 256  }
   0xc   :  { %217 = vsyncadd [#allocation7], 4294967040  ;;  %v62_v0 = vld [vmem:[#allocation3] sm:$0xff]  ;;  %v63_v1 = vld [vmem:[#allocation3 + $0x8] sm:$0xff]  ;;  %s224_s0 = smov [#allocation8]   ;;  %s124_s23 = sshll.u32 %s251_s2, 4  ;;  %s125_s23 = int_to_ptr.hbm [resolvable:$true] %s124_s23 }
   0xd   :  { %v64_v2 = vld [vmem:[#allocation6] sm:$0xff]  ;;  %v65_v3 = vld [vmem:[#allocation6 + $0x8] sm:$0xff]  ;;  %s122_s1 = sshll.u32 %s224_s0, 4  ;;  %s123_s1 = int_to_ptr.vmem [resolvable:$true] %s122_s1 }
   0xe   :  { %v66_v4 = vsub.f32 %v64_v2, %v62_v0  ;;  %v67_v5 = vsub.f32 %v65_v3, %v63_v1 }
  0x10   :  { %v68_v6 = vand.u32 2147483647, %v66_v4  ;;  %v69_v7 = vand.u32 2147483647, %v67_v5 }
  0x12   :  { %v72_v8 = vmul.f32 0.5, %v68_v6  ;;  %v135_v9 = vadd.f32 -0.75, %v68_v6  ;;  %vm70_vm0 = vcmp.lt.f32.partialorder %v68_v6, 1.5  ;;  %v73_v10 = vmul.f32 0.5, %v69_v7 }
  0x13   :  { %v136_v11 = vadd.f32 -0.75, %v69_v7  ;;  %vm71_vm1 = vcmp.lt.f32.partialorder %v69_v7, 1.5 }
  0x14   :  { %v74_v12 = vmul.f32 %v72_v8, %v68_v6  ;;  %v78_v13 = vmul.f32 1.5, %v135_v9  ;;  %v75_v14 = vmul.f32 %v73_v10, %v69_v7 }
  0x15   :  { %v79_v15 = vmul.f32 1.5, %v136_v11 }
  0x16   :  { %v80_v16 = vsel %vm70_vm0, %v74_v12, %v78_v13 }
  0x17   :  { %v81_v17 = vsel %vm71_vm1, %v75_v14, %v79_v15  ;;  %v82_v18 = vsub.f32 %v68_v6, %v80_v16  ;;  %v84_v19 = vmul.f32 0.5, %v80_v16 }
  0x18   :  { %v83_v20 = vsub.f32 %v69_v7, %v81_v17  ;;  %v85_v21 = vmul.f32 0.5, %v81_v17 }
  0x19   :  { %v86_v22 = vmul.f32 %v84_v19, %v80_v16  ;;  %v88_v23 = vmul.f32 1.5, %v82_v18 }
  0x1a   :  { %v87_v24 = vmul.f32 %v85_v21, %v81_v17  ;;  %v89_v25 = vmul.f32 1.5, %v83_v20 }
  0x1b   :  { %v90_v26 = vadd.f32 %v88_v23, %v86_v22 }
  0x1c   :  { %v91_v27 = vadd.f32 %v89_v25, %v87_v24 }
  0x1e   :  { %v115_v28 = vadd.f32 %v91_v27, %v90_v26 }
  0x20   :  { %116 = vst [vmem:[#allocation8] sm:$0xff] %v115_v28 }
  0x21   :  { %127 = dma.vmem_to_hbm [thread:$0]  %s123_s1, 128, %s125_s23, [#allocation5]  }
  0x22   :  { %218 = dma.done.wait [#allocation5], 128  }
  0x23   :  { %219 = vsyncadd [#allocation5], 4294967168 }
  0x24   :  { %132 = vsyncpa [#allocation4], 1 }
  0x25   :  { %133 = vsyncpa [#allocation7], 1 }
  0x26   :  { %134 = vsyncpa [#allocation5], 1 }

</bundles_post_ra>
